<compile_context>
chip_gen: v7x
topology: tpu7x:2x2x1
jax: 0.10.0
libtpu: 0.0.40
codegen_flags: <defaults>
</compile_context>

<pallas_src>
import math
from functools import partial

import jax
import jax.numpy as jnp
from jax.experimental import pallas as pl
from jax.experimental.pallas import tpu as pltpu


# --------------------------------------------------------------------------- #
# Kernels
# --------------------------------------------------------------------------- #
def _matmul_kernel_single_k(a_ref, b_ref, o_ref):
    """One (TM, TN) output tile; the whole K reduction fits in a single block."""
    o_ref[...] = jnp.dot(
        a_ref[...], b_ref[...], preferred_element_type=jnp.float32
    ).astype(o_ref.dtype)


def _matmul_kernel_multi_k(a_ref, b_ref, o_ref, acc_ref):
    """One (TM, TN) output tile, accumulating over the K grid axis (axis 2)."""

    @pl.when(pl.program_id(2) == 0)
    def _():
        acc_ref[...] = jnp.zeros_like(acc_ref)

    acc_ref[...] += jnp.dot(
        a_ref[...], b_ref[...], preferred_element_type=jnp.float32
    )

    @pl.when(pl.program_id(2) == pl.num_programs(2) - 1)
    def _():
        o_ref[...] = acc_ref[...].astype(o_ref.dtype)


# --------------------------------------------------------------------------- #
# Tiled matmul wrapper
# --------------------------------------------------------------------------- #
def _ceil_to(v: int, m: int) -> int:
    return ((v + m - 1) // m) * m


def _pad_axis(x: jax.Array, axis: int, new_size: int) -> jax.Array:
    pad = new_size - x.shape[axis]
    if pad == 0:
        return x
    widths = [(0, 0)] * x.ndim
    widths[axis] = (0, pad)
    return jnp.pad(x, widths)


def _tiled_matmul(
    a: jax.Array,
    b: jax.Array,
    *,
    out_dtype,
    tm: int = 256,
    tn: int = 256,
    tk: int = 512,
):
    """(M, K) @ (K, N) -> (M, N) in out_dtype via a tiled Pallas MXU matmul.

    Inputs are typically bf16; accumulation is always f32.
    """
    M, K = a.shape
    K2, N = b.shape
    assert K == K2

    # ---- tile / padded-extent selection (respect the (8, 128) rule) -------- #
    # M: sublane dim of the A tile and of the output tile -> multiple of 8.
    if M <= tm:
        TM = _ceil_to(M, 8)
        Mp = TM
    else:
        TM = tm
        Mp = _ceil_to(M, TM)

    # K: lane dim of A / sublane dim of B -> always pad to a multiple of 128
    # so vector loads feeding the MXU are unmasked and lane-dense.
    if K <= tk:
        TK = _ceil_to(K, 128)
        Kp = TK
    else:
        TK = tk
        Kp = _ceil_to(K, TK)

    # N (Cout): lane dim of B and of the output tile -> pad to a multiple of
    # 128 even when small (lane-dense out_spec avoids masked vst.msk stores).
    if N <= tn:
        TN = _ceil_to(N, 128)
        Np = TN
    else:
        TN = tn
        Np = _ceil_to(N, TN)

    # Keep the whole weight matrix VMEM-resident when it is small: a single
    # full-extent B block is DMA'd once instead of being re-streamed for every
    # M tile.  (A tile then spans full K, which is still tiny for conv weights.)
    b_item = jnp.dtype(b.dtype).itemsize
    if Kp * Np * b_item <= 4 * 1024 * 1024 and Kp <= 2048 and Np <= 1024:
        TK, TN = Kp, Np

    # ---- pad operands (zero rows/cols cannot perturb the accumulation) ----- #
    a = _pad_axis(_pad_axis(a, 0, Mp), 1, Kp)
    b = _pad_axis(_pad_axis(b, 0, Kp), 1, Np)

    grid = (Mp // TM, Np // TN, Kp // TK)
    n_k_steps = grid[2]

    a_item = jnp.dtype(a.dtype).itemsize
    o_item = jnp.dtype(out_dtype).itemsize
    cost = pl.CostEstimate(
        flops=2 * M * K * N,
        transcendentals=0,
        bytes_accessed=M * K * a_item + K * N * b_item + M * N * o_item,
    )

    if n_k_steps == 1:
        kernel = _matmul_kernel_single_k
        scratch_shapes = []
    else:
        kernel = _matmul_kernel_multi_k
        scratch_shapes = [pltpu.VMEM((TM, TN), jnp.float32)]

    out = pl.pallas_call(
        kernel,
        out_shape=jax.ShapeDtypeStruct((Mp, Np), out_dtype),
        grid=grid,
        in_specs=[
            pl.BlockSpec((TM, TK), lambda i, j, k: (i, k)),
            pl.BlockSpec((TK, TN), lambda i, j, k: (k, j)),
        ],
        out_specs=pl.BlockSpec((TM, TN), lambda i, j, k: (i, j)),
        scratch_shapes=scratch_shapes,
        compiler_params=pltpu.CompilerParams(
            dimension_semantics=("parallel", "parallel", "arbitrary"),
            vmem_limit_bytes=48 * 1024 * 1024,
        ),
        cost_estimate=cost,
    )(a, b)
    return out[:M, :N]


# --------------------------------------------------------------------------- #
# conv2d forward (== F.conv2d(x, weight, stride=stride, padding=padding))
# --------------------------------------------------------------------------- #
@partial(jax.jit, static_argnames=("stride", "padding"))
def conv2d(x: jax.Array, weight: jax.Array, *, stride: int = 1, padding: int = 0):
    """x: (N, Cin, H, W), weight: (Cout, Cin, KH, KW) -> (N, Cout, OH, OW)."""
    N, Cin, H, W = x.shape
    Cout, Cin_w, KH, KW = weight.shape
    assert Cin == Cin_w
    OH = (H + 2 * padding - KH) // stride + 1
    OW = (W + 2 * padding - KW) // stride + 1

    # NHWC so the channel dim is lane-dense; cast to bf16 early so the
    # materialized im2col matrix is half the HBM bytes.  MXU accumulation
    # stays f32 inside the kernel.
    x_nhwc = jnp.transpose(x, (0, 2, 3, 1)).astype(jnp.bfloat16)
    if padding:
        x_nhwc = jnp.pad(
            x_nhwc, ((0, 0), (padding, padding), (padding, padding), (0, 0))
        )

    # im2col: last axis ordered (kh, kw, cin) — must match the weight permute.
    patches = [
        x_nhwc[
            :,
            kh : kh + (OH - 1) * stride + 1 : stride,
            kw : kw + (OW - 1) * stride + 1 : stride,
            :,
        ]
        for kh in range(KH)
        for kw in range(KW)
    ]
    cols = jnp.concatenate(patches, axis=-1)  # (N, OH, OW, KH*KW*Cin), bf16

    M = N * OH * OW
    K = KH * KW * Cin
    a = cols.reshape(M, K)
    b = (
        jnp.transpose(weight, (2, 3, 1, 0))
        .reshape(K, Cout)
        .astype(jnp.bfloat16)
    )  # (KH*KW*Cin, Cout)

    out = _tiled_matmul(a, b, out_dtype=x.dtype)  # (M, Cout) in x.dtype
    out = out.reshape(N, OH, OW, Cout)
    return jnp.transpose(out, (0, 3, 1, 2))  # back to NCHW


# --------------------------------------------------------------------------- #
# Self-test
# --------------------------------------------------------------------------- #
if __name__ == "__main__":
    key = jax.random.PRNGKey(0)
    kx, kw = jax.random.split(key)

    # Small shapes consistent with the module: batch=2, in_channels=4, 16x16.
    N, Cin, H, W = 2, 4, 16, 16
    Cout, KS, stride, padding = 8, 3, 1, 1

    x = jax.random.normal(kx, (N, Cin, H, W), dtype=jnp.float32)
    # PyTorch-style init: uniform in [-sf, sf], sf = 1/sqrt(Cin*KH*KW).
    sf = 1.0 / math.sqrt(Cin * KS * KS)
    weight = sf * (
        2.0 * jax.random.uniform(kw, (Cout, Cin, KS, KS), dtype=jnp.float32) - 1.0
    )

    y = conv2d(x, weight, stride=stride, padding=padding)
    y = jax.block_until_ready(y)

    ref = jax.lax.conv_general_dilated(
        x,
        weight,
        window_strides=(stride, stride),
        padding=[(padding, padding), (padding, padding)],
        dimension_numbers=("NCHW", "OIHW", "NCHW"),
        precision=jax.lax.Precision.HIGHEST,
    )

    assert y.shape == ref.shape == (N, Cout, H, W), y.shape
    assert y.dtype == x.dtype
    # Operands are rounded to bf16 (accumulation in f32), so compare against the
    # HIGHEST-precision f32 reference with a bf16-appropriate tolerance.
    max_err = float(jnp.max(jnp.abs(y - ref)))
    assert bool(jnp.allclose(y, ref, atol=2e-2, rtol=2e-2)), max_err

    print("KERNEL_OK")
</pallas_src>

<mosaic_0001>
module attributes {stable_mosaic.version = 11 : i64} {
  func.func @_matmul_kernel_single_k(%arg0: i32, %arg1: i32, %arg2: i32, %arg3: memref<256x128xbf16, #tpu.memory_space<vmem>>, %arg4: memref<128x128xbf16, #tpu.memory_space<vmem>>, %arg5: memref<256x128xf32, #tpu.memory_space<vmem>>) attributes {dimension_semantics = [#tpu.dimension_semantics<parallel>, #tpu.dimension_semantics<parallel>, #tpu.dimension_semantics<arbitrary>], iteration_bounds = array<i64: 2, 1, 1>, scalar_prefetch = 0 : i64, scratch_operands = 0 : i64, tpu.core_type = #tpu.core_type<tc>, window_params = [{transform_indices = @transform_0, window_bounds = array<i64: 256, 128>}, {transform_indices = @transform_1, window_bounds = array<i64: 128, 128>}, {transform_indices = @transform_2, window_bounds = array<i64: 256, 128>}]} {
    %c0 = arith.constant 0 : index
    %c0_0 = arith.constant 0 : index
    %0 = vector.load %arg3[%c0, %c0_0] : memref<256x128xbf16, #tpu.memory_space<vmem>>, vector<256x128xbf16>
    %c0_1 = arith.constant 0 : index
    %c0_2 = arith.constant 0 : index
    %1 = vector.load %arg4[%c0_1, %c0_2] : memref<128x128xbf16, #tpu.memory_space<vmem>>, vector<128x128xbf16>
    %cst = arith.constant dense<0.000000e+00> : vector<256x128xf32>
    %2 = tpu.matmul %0, %1, %cst {dimension_numbers = #tpu.dot_dimension_numbers<[1], [0], [0], [1], [0, 0, 1, 1], [], []>} : vector<256x128xbf16>, vector<128x128xbf16>, vector<256x128xf32> -> vector<256x128xf32>
    %c0_3 = arith.constant 0 : index
    %c0_4 = arith.constant 0 : index
    %3 = vector.load %arg5[%c0_3, %c0_4] : memref<256x128xf32, #tpu.memory_space<vmem>>, vector<256x128xf32>
    tpu.vector_store %arg5[%c0_3, %c0_4], %2 {strides = array<i32>} : memref<256x128xf32, #tpu.memory_space<vmem>>, vector<256x128xf32>,
    return
  }
  func.func @transform_0(%arg0: i32, %arg1: i32, %arg2: i32) -> (i32, i32) {
    %c0_i32 = arith.constant 0 : i32
    return %arg0, %arg2 : i32, i32
  }
  func.func @transform_1(%arg0: i32, %arg1: i32, %arg2: i32) -> (i32, i32) {
    %c0_i32 = arith.constant 0 : i32
    return %arg2, %arg1 : i32, i32
  }
  func.func @transform_2(%arg0: i32, %arg1: i32, %arg2: i32) -> (i32, i32) {
    %c0_i32 = arith.constant 0 : i32
    return %arg0, %arg1 : i32, i32
  }
}

</mosaic_0001>

<bundles_post_ra>
// kernel: conv2d.1
= control target key start
LH: loop header
LB: loop body
LE: loop exit
PB: predicated region body
PF: predicated region fallthrough
CT: control target
= control target key end

     0   :  { %s914_s9 = smov 0   ;;  %s916_s10 = smov 0   ;;  %s1027_s0 = inlined_call_operand.vmem [shape: bf16[512,128], index: 0, kind: input, shape index: {}]   ;;  %s1028_s1 = inlined_call_operand.vmem [shape: bf16[128,128], index: 1, kind: input, shape index: {}]   ;;  %s1029_s2 = inlined_call_operand.vmem [shape: f32[512,128], index: 2, kind: output, shape index: {}]  }
   0x1   :  { %s918_s11 = smov 0  }
   0x2 LB: > { %s31_s12 = sadd.s32 1, %s893_s10  ;;  %p708_p0 = scmp.ge.s32.totalorder %s897_s11, 1  ;;  %s897_s11 = sphi %s918_s11, %s12_s11   ;;  %s893_s10 = sphi %s916_s10, %s1031_s10   ;;  %s889_s9 = sphi %s914_s9, %s1030_s9  }
   0x3   : > { %p33_p1 = scmp.ge.s32.totalorder %s31_s12, 2  ;;  %p155_p2 = scmp.lt.s32.totalorder %s897_s11, 3 }
   0x5   : > { %s1033_s12 = smov (%p33_p1, %s31_s12), 0  ;;  %p156_p3 = pnand %p708_p0, %p155_p2 }
   0x6   : > { %v851_v0 = vld [vmem:[%s1028_s1] sm:$0xff] (!%p156_p3)   ;;  %s709_s15 = sshll.u32 (!%p156_p3), %s889_s9, 5  ;;  %v852_v1 = vld [vmem:[%s1028_s1 + $0x8] sm:$0xff] (!%p156_p3)   ;;  %v853_v2 = vld [vmem:[%s1028_s1 + $0x10] sm:$0xff] (!%p156_p3)  }
   0x7   : > { %159 = sbr.rel (%p156_p3) target bundleno = 279 (0x117), region = 28  ;;  %p192_p4 = scmp.lt.s32.totalorder (!%p156_p3), %s709_s15, 63  ;;  %763 = vmatprep.subr.bf16.mxu0 (!%p156_p3), %v851_v0  ;;  %811 = vmatprep.subr.bf16.mxu1 (!%p156_p3), %v851_v0  ;;  %v854_v3 = vld [vmem:[%s1028_s1 + $0x18] sm:$0xff] (!%p156_p3)   ;;  %v855_v6 = vld [vmem:[%s1028_s1 + $0x20] sm:$0xff] (!%p156_p3)   ;;  %v856_v7 = vld [vmem:[%s1028_s1 + $0x28] sm:$0xff] (!%p156_p3)  }
   0x8   : > { %764 = vmatpush3.bf16.msra.mxu0 (!%p156_p3), %v851_v0  ;;  %819 = vmatpush3.bf16.msra.mxu1 (!%p156_p3), %v851_v0  ;;  %v857_v8 = vld [vmem:[%s1028_s1 + $0x30] sm:$0xff] (!%p156_p3)   ;;  %v858_v9 = vld [vmem:[%s1028_s1 + $0x38] sm:$0xff] (!%p156_p3)  }
   0x9   : > { %765 = vmatprep.subr.bf16.mxu0 (!%p156_p3), %v852_v1  ;;  %812 = vmatprep.subr.bf16.mxu1 (!%p156_p3), %v852_v1 }
   0xc   : > { %766 = vmatpush3.bf16.msra.mxu0 (!%p156_p3), %v852_v1  ;;  %820 = vmatpush3.bf16.msra.mxu1 (!%p156_p3), %v852_v1 }
   0xd   : > { %767 = vmatprep.subr.bf16.mxu0 (!%p156_p3), %v853_v2  ;;  %813 = vmatprep.subr.bf16.mxu1 (!%p156_p3), %v853_v2 }
   0xe   : > { %s1035_s15 = smov (!%p192_p4, %s709_s15), 63 }
   0xf   : > { %s710_s20 = sshll.u32 %s1035_s15, 2  ;;  %s712_s6 = sshll.u32 %s1035_s15, 3 }
  0x10   : > { %s947_s23 = scalar_lea.vmem %s1027_s0, %s710_s20  ;;  %768 = vmatpush3.bf16.msra.mxu0 %v853_v2  ;;  %821 = vmatpush3.bf16.msra.mxu1 %v853_v2  ;;  %s984_s9 = scalar_lea.vmem %s1029_s2, %s712_s6 }
  0x11   : > { %v859_v4 = vld [vmem:[%s947_s23] sm:$0xff]   ;;  %769 = vmatprep.subr.bf16.mxu0 %v854_v3  ;;  %814 = vmatprep.subr.bf16.mxu1 %v854_v3  ;;  %v861_v10 = vld [vmem:[%s947_s23 + $0x8] sm:$0xff]   ;;  %v863_v12 = vld [vmem:[%s947_s23 + $0x10] sm:$0xff]  }
  0x12   : > { %v860_v5 = vld [vmem:[%s947_s23 + $0x40] sm:$0xff]   ;;  %779 = vmatprep.mubr.bf16.mxu0 %v859_v4  ;;  %v862_v11 = vld [vmem:[%s947_s23 + $0x48] sm:$0xff]   ;;  %v864_v13 = vld [vmem:[%s947_s23 + $0x50] sm:$0xff]  }
  0x13   : > { %795 = vmatprep.mubr.bf16.mxu1 %v860_v5  ;;  %v865_v14 = vld [vmem:[%s947_s23 + $0x18] sm:$0xff]   ;;  %v867_v16 = vld [vmem:[%s947_s23 + $0x20] sm:$0xff]   ;;  %v869_v18 = vld [vmem:[%s947_s23 + $0x28] sm:$0xff]  }
  0x14   : > { %770 = vmatpush3.bf16.msra.mxu0 %v854_v3  ;;  %822 = vmatpush3.bf16.msra.mxu1 %v854_v3  ;;  %v866_v15 = vld [vmem:[%s947_s23 + $0x58] sm:$0xff]   ;;  %v868_v17 = vld [vmem:[%s947_s23 + $0x60] sm:$0xff]   ;;  %v870_v19 = vld [vmem:[%s947_s23 + $0x68] sm:$0xff]  }
  0x15   : > { %771 = vmatprep.subr.bf16.mxu0 %v855_v6  ;;  %815 = vmatprep.subr.bf16.mxu1 %v855_v6  ;;  %v871_v20 = vld [vmem:[%s947_s23 + $0x30] sm:$0xff]   ;;  %v873_v22 = vld [vmem:[%s947_s23 + $0x38] sm:$0xff]  }
  0x16   : > { %v872_v21 = vld [vmem:[%s947_s23 + $0x70] sm:$0xff]   ;;  %v874_v23 = vld [vmem:[%s947_s23 + $0x78] sm:$0xff]  }
  0x18   : > { %772 = vmatpush3.bf16.msra.mxu0 %v855_v6  ;;  %823 = vmatpush3.bf16.msra.mxu1 %v855_v6 }
  0x19   : > { %773 = vmatprep.subr.bf16.mxu0 %v856_v7  ;;  %816 = vmatprep.subr.bf16.mxu1 %v856_v7 }
  0x1c   : > { %774 = vmatpush3.bf16.msra.mxu0 %v856_v7  ;;  %824 = vmatpush3.bf16.msra.mxu1 %v856_v7 }
  0x1d   : > { %775 = vmatprep.subr.bf16.mxu0 %v857_v8  ;;  %817 = vmatprep.subr.bf16.mxu1 %v857_v8 }
  0x20   : > { %776 = vmatpush3.bf16.msra.mxu0 %v857_v8  ;;  %825 = vmatpush3.bf16.msra.mxu1 %v857_v8 }
  0x21   : > { %777 = vmatprep.subr.bf16.mxu0 %v858_v9  ;;  %818 = vmatprep.subr.bf16.mxu1 %v858_v9 }
  0x24   : > { %778 = vmatpush3.bf16.msra.mxu0 %v858_v9  ;;  %826 = vmatpush3.bf16.msra.mxu1 %v858_v9 }
  0x27   : > { %780 = vmatmul.mubr.bf16.vlgmr.msra.gmra.mrb[0].mxu0 %v861_v10  ;;  %796 = vmatmul.mubr.bf16.vlgmr.msra.gmra.mrb[0].mxu1 %v862_v11 }
  0x28   : > { %783 = vmatprep.mubr.bf16.mxu0 %v863_v12  ;;  %799 = vmatprep.mubr.bf16.mxu1 %v864_v13 }
  0x2f   : > { %784 = vmatmul.mubr.bf16.gmra.mrb[4].mxu0 %v865_v14  ;;  %800 = vmatmul.mubr.bf16.gmra.mrb[4].mxu1 %v866_v15 }
  0x30   : > { %787 = vmatprep.mubr.bf16.mxu0 %v867_v16  ;;  %803 = vmatprep.mubr.bf16.mxu1 %v868_v17 }
  0x37   : > { %788 = vmatmul.mubr.bf16.gmra.mrb[8].mxu0 %v869_v18  ;;  %804 = vmatmul.mubr.bf16.gmra.mrb[8].mxu1 %v870_v19 }
  0x38   : > { %791 = vmatprep.mubr.bf16.mxu0 %v871_v20  ;;  %807 = vmatprep.mubr.bf16.mxu1 %v872_v21 }
  0x3f   : > { %792 = vmatmul.mubr.bf16.gmra.mrb[12].mxu0 %v873_v22  ;;  %808 = vmatmul.mubr.bf16.gmra.mrb[12].mxu1 %v874_v23 }
  0xfa   : > { %v781_v24 = vpop.f32.mrb[0].mxu0  ;;  %v797_v25 = vpop.f32.mrb[0].mxu1 }
  0xfb   : > { %574 = vst [vmem:[%s984_s9 + $0x10] sm:$0xff] %v781_v24  ;;  %590 = vst [vmem:[%s984_s9 + $0x90] sm:$0xff] %v797_v25  ;;  %v445_v26 = vpop.f32.mrb[1].mxu0  ;;  %v509_v27 = vpop.f32.mrb[1].mxu1 }
  0xfc   : > { %572 = vst [vmem:[%s984_s9] sm:$0xff] %v445_v26  ;;  %588 = vst [vmem:[%s984_s9 + $0x80] sm:$0xff] %v509_v27  ;;  %v782_v28 = vpop.f32.mrb[2].mxu0  ;;  %v798_v29 = vpop.f32.mrb[2].mxu1 }
  0xfd   : > { %575 = vst [vmem:[%s984_s9 + $0x18] sm:$0xff] %v782_v28  ;;  %591 = vst [vmem:[%s984_s9 + $0x98] sm:$0xff] %v798_v29  ;;  %v448_v30 = vpop.f32.mrb[3].mxu0  ;;  %v512_v31 = vpop.f32.mrb[3].mxu1 }
  0xfe   : > { %573 = vst [vmem:[%s984_s9 + $0x8] sm:$0xff] %v448_v30  ;;  %589 = vst [vmem:[%s984_s9 + $0x88] sm:$0xff] %v512_v31 }
 0x102   : > { %v785_v32 = vpop.f32.mrb[4].mxu0  ;;  %v801_v33 = vpop.f32.mrb[4].mxu1 }
 0x103   : > { %578 = vst [vmem:[%s984_s9 + $0x30] sm:$0xff] %v785_v32  ;;  %594 = vst [vmem:[%s984_s9 + $0xb0] sm:$0xff] %v801_v33  ;;  %v461_v34 = vpop.f32.mrb[5].mxu0  ;;  %v525_v35 = vpop.f32.mrb[5].mxu1 }
 0x104   : > { %576 = vst [vmem:[%s984_s9 + $0x20] sm:$0xff] %v461_v34  ;;  %592 = vst [vmem:[%s984_s9 + $0xa0] sm:$0xff] %v525_v35  ;;  %v786_v36 = vpop.f32.mrb[6].mxu0  ;;  %v802_v37 = vpop.f32.mrb[6].mxu1 }
 0x105   : > { %579 = vst [vmem:[%s984_s9 + $0x38] sm:$0xff] %v786_v36  ;;  %595 = vst [vmem:[%s984_s9 + $0xb8] sm:$0xff] %v802_v37  ;;  %v464_v38 = vpop.f32.mrb[7].mxu0  ;;  %v528_v39 = vpop.f32.mrb[7].mxu1 }
 0x106   : > { %577 = vst [vmem:[%s984_s9 + $0x28] sm:$0xff] %v464_v38  ;;  %593 = vst [vmem:[%s984_s9 + $0xa8] sm:$0xff] %v528_v39 }
 0x10a   : > { %v789_v40 = vpop.f32.mrb[8].mxu0  ;;  %v805_v41 = vpop.f32.mrb[8].mxu1 }
 0x10b   : > { %582 = vst [vmem:[%s984_s9 + $0x50] sm:$0xff] %v789_v40  ;;  %598 = vst [vmem:[%s984_s9 + $0xd0] sm:$0xff] %v805_v41  ;;  %v477_v42 = vpop.f32.mrb[9].mxu0  ;;  %v541_v43 = vpop.f32.mrb[9].mxu1 }
 0x10c   : > { %580 = vst [vmem:[%s984_s9 + $0x40] sm:$0xff] %v477_v42  ;;  %596 = vst [vmem:[%s984_s9 + $0xc0] sm:$0xff] %v541_v43  ;;  %v790_v44 = vpop.f32.mrb[10].mxu0  ;;  %v806_v45 = vpop.f32.mrb[10].mxu1 }
 0x10d   : > { %583 = vst [vmem:[%s984_s9 + $0x58] sm:$0xff] %v790_v44  ;;  %599 = vst [vmem:[%s984_s9 + $0xd8] sm:$0xff] %v806_v45  ;;  %v480_v46 = vpop.f32.mrb[11].mxu0  ;;  %v544_v47 = vpop.f32.mrb[11].mxu1 }
 0x10e   : > { %581 = vst [vmem:[%s984_s9 + $0x48] sm:$0xff] %v480_v46  ;;  %597 = vst [vmem:[%s984_s9 + $0xc8] sm:$0xff] %v544_v47 }
 0x112   : > { %v793_v48 = vpop.f32.mrb[12].mxu0  ;;  %v809_v49 = vpop.f32.mrb[12].mxu1 }
 0x113   : > { %586 = vst [vmem:[%s984_s9 + $0x70] sm:$0xff] %v793_v48  ;;  %602 = vst [vmem:[%s984_s9 + $0xf0] sm:$0xff] %v809_v49  ;;  %v493_v50 = vpop.f32.mrb[13].mxu0  ;;  %v557_v51 = vpop.f32.mrb[13].mxu1 }
 0x114   : > { %584 = vst [vmem:[%s984_s9 + $0x60] sm:$0xff] %v493_v50  ;;  %600 = vst [vmem:[%s984_s9 + $0xe0] sm:$0xff] %v557_v51  ;;  %v794_v52 = vpop.f32.mrb[14].mxu0  ;;  %v810_v53 = vpop.f32.mrb[14].mxu1 }
 0x115   : > { %587 = vst [vmem:[%s984_s9 + $0x78] sm:$0xff] %v794_v52  ;;  %603 = vst [vmem:[%s984_s9 + $0xf8] sm:$0xff] %v810_v53  ;;  %v496_v54 = vpop.f32.mrb[15].mxu0  ;;  %v560_v55 = vpop.f32.mrb[15].mxu1 }
 0x116   : > { %585 = vst [vmem:[%s984_s9 + $0x68] sm:$0xff] %v496_v54  ;;  %601 = vst [vmem:[%s984_s9 + $0xe8] sm:$0xff] %v560_v55 }
 0x117 PF: > { %s12_s11 = sadd.s32 1, %s897_s11   ;;  %s1030_s9 = smov %s893_s10 }
 0x118   : > { %p9_p5 = scmp.ge.s32.totalorder %s12_s11, 4   ;;  %s1031_s10 = smov %s1033_s12 }
 0x11a   :  { %11 = sbr.rel (!%p9_p5) target bundleno = 2 (0x2), region = 61 }

</bundles_post_ra>
